<compile_context>
chip_gen: v7x
topology: tpu7x:2x2x1
jax: 0.10.0
libtpu: 0.0.40
codegen_flags: <defaults>
</compile_context>

<pallas_src>
import jax
import jax.numpy as jnp
from jax.experimental import pallas as pl
from jax.experimental.pallas import tpu as pltpu


def _round_up(n, m):
    return ((n + m - 1) // m) * m


def _surv_kernel(x_ref, w_ref, b_ref, out_ref):
    # (tm, D) @ (D, F) on the MXU, f32 accumulation.
    z = jnp.dot(x_ref[...], w_ref[...], preferred_element_type=jnp.float32)
    z = z + b_ref[...]                       # b_ref is (1, F): broadcasts over rows
    hazard = jax.nn.sigmoid(z)
    comp = jax.nn.sigmoid(-z)                # numerically better than 1 - sigmoid(z)
    # Single fused store: lanes [0:F] = 1-hazard, [F:2F] = hazard.
    out_ref[...] = jnp.concatenate([comp, hazard], axis=-1).astype(out_ref.dtype)


def surv_probability(x, weight_t, bias, *, tm=512, out_dtype=None):
    """x: (B, D); weight_t: (D, F) (pre-transposed nn.Linear weight); bias: (F,).

    Returns probs of shape (B, 2, F) matching
    torch.stack([1 - sigmoid(x @ W.T + b), sigmoid(x @ W.T + b)], dim=1).
    """
    B, D = x.shape
    Dw, F = weight_t.shape
    assert Dw == D
    out_dtype = out_dtype if out_dtype is not None else x.dtype

    # Row tile: multiple of 8 sublanes, no bigger than the (padded) batch.
    tm = max(8, _round_up(min(tm, B), 8))
    Bp = _round_up(B, tm)
    if Bp != B:
        x = jnp.pad(x, ((0, Bp - B), (0, 0)))

    bias2d = bias.reshape(1, F)

    out = pl.pallas_call(
        _surv_kernel,
        out_shape=jax.ShapeDtypeStruct((Bp, 2 * F), out_dtype),
        grid_spec=pltpu.PrefetchScalarGridSpec(
            num_scalar_prefetch=0,
            grid=(Bp // tm,),
            in_specs=[
                pl.BlockSpec((tm, D), lambda i: (i, 0)),   # x row tile
                pl.BlockSpec((D, F), lambda i: (0, 0)),    # resident weight
                pl.BlockSpec((1, F), lambda i: (0, 0)),    # resident bias
            ],
            out_specs=pl.BlockSpec((tm, 2 * F), lambda i: (i, 0)),
        ),
        compiler_params=pltpu.CompilerParams(
            dimension_semantics=("parallel",),   # shards row tiles across TCs (v7x)
        ),
    )(x, weight_t, bias2d)

    # Free row-major view: (B, 2F) -> (B, 2, F); plane 0 = 1-hazard, plane 1 = hazard.
    return out[:B].reshape(B, 2, F)


if __name__ == "__main__":
    IN_FEATURES, OUT_FEATURES = 32, 16

    key = jax.random.PRNGKey(0)
    kx, kw, kb = jax.random.split(key, 3)

    # Deterministic init mimicking nn.Linear: U(-1/sqrt(in), 1/sqrt(in)).
    bound = 1.0 / (IN_FEATURES ** 0.5)
    # PyTorch stores W as (out, in); keep it pre-transposed as (in, out).
    weight_t = jax.random.uniform(
        kw, (IN_FEATURES, OUT_FEATURES), jnp.float32, -bound, bound)
    bias = jax.random.uniform(kb, (OUT_FEATURES,), jnp.float32, -bound, bound)

    ok = True
    # Ragged small batch (exercises padding path) and a multi-tile batch.
    for B, tm in ((10, 512), (48, 16)):
        kxb = jax.random.fold_in(kx, B)
        x = jax.random.normal(kxb, (B, IN_FEATURES), dtype=jnp.float32)

        probs = surv_probability(x, weight_t, bias, tm=tm)
        probs = jax.block_until_ready(probs)

        hazard_ref = jax.nn.sigmoid(x @ weight_t + bias)
        probs_ref = jnp.stack([1.0 - hazard_ref, hazard_ref], axis=1)

        ok &= probs.shape == (B, 2, OUT_FEATURES)
        ok &= bool(jnp.allclose(probs, probs_ref, atol=1e-6, rtol=1e-6))

    assert ok
    print("KERNEL_OK")
</pallas_src>

<mosaic_0001>
module attributes {stable_mosaic.version = 11 : i64} {
  func.func @_surv_kernel(%arg0: i32, %arg1: memref<16x32xf32, #tpu.memory_space<vmem>>, %arg2: memref<32x16xf32, #tpu.memory_space<vmem>>, %arg3: memref<1x16xf32, #tpu.memory_space<vmem>>, %arg4: memref<16x32xf32, #tpu.memory_space<vmem>>) attributes {dimension_semantics = [#tpu.dimension_semantics<parallel>], iteration_bounds = array<i64: 1>, scalar_prefetch = 0 : i64, scratch_operands = 0 : i64, tpu.core_type = #tpu.core_type<tc>, window_params = [{transform_indices = @transform_0, window_bounds = array<i64: 16, 32>}, {pipeline_mode = #tpu.pipeline_mode<synchronous>, transform_indices = @transform_1, window_bounds = array<i64: 32, 16>}, {pipeline_mode = #tpu.pipeline_mode<synchronous>, transform_indices = @transform_2, window_bounds = array<i64: 1, 16>}, {transform_indices = @transform_3, window_bounds = array<i64: 16, 32>}]} {
    %c0 = arith.constant 0 : index
    %c0_0 = arith.constant 0 : index
    %0 = vector.load %arg1[%c0, %c0_0] : memref<16x32xf32, #tpu.memory_space<vmem>>, vector<16x32xf32>
    %c0_1 = arith.constant 0 : index
    %c0_2 = arith.constant 0 : index
    %1 = vector.load %arg2[%c0_1, %c0_2] : memref<32x16xf32, #tpu.memory_space<vmem>>, vector<32x16xf32>
    %cst = arith.constant dense<0.000000e+00> : vector<16x16xf32>
    %2 = tpu.matmul %0, %1, %cst {dimension_numbers = #tpu.dot_dimension_numbers<[1], [0], [0], [1], [0, 0, 1, 1], [], []>} : vector<16x32xf32>, vector<32x16xf32>, vector<16x16xf32> -> vector<16x16xf32>
    %c0_3 = arith.constant 0 : index
    %c0_4 = arith.constant 0 : index
    %3 = vector.load %arg3[%c0_3, %c0_4] : memref<1x16xf32, #tpu.memory_space<vmem>>, vector<1x16xf32>
    %4 = vector.broadcast %3 : vector<1x16xf32> to vector<16x16xf32>
    %5 = arith.addf %2, %4 : vector<16x16xf32>
    %6 = arith.negf %5 : vector<16x16xf32>
    %7 = math.exp %6 : vector<16x16xf32>
    %cst_5 = arith.constant 1.000000e+00 : f32
    %8 = vector.broadcast %cst_5 : f32 to vector<16x16xf32>
    %9 = arith.addf %8, %7 : vector<16x16xf32>
    %10 = arith.divf %8, %9 : vector<16x16xf32>
    %cst_6 = arith.constant 0.000000e+00 : f32
    %11 = vector.broadcast %cst_6 : f32 to vector<16x16xf32>
    %12 = arith.subf %11, %5 : vector<16x16xf32>
    %13 = arith.negf %12 : vector<16x16xf32>
    %14 = math.exp %13 : vector<16x16xf32>
    %cst_7 = arith.constant 1.000000e+00 : f32
    %15 = vector.broadcast %cst_7 : f32 to vector<16x16xf32>
    %16 = arith.addf %15, %14 : vector<16x16xf32>
    %17 = arith.divf %15, %16 : vector<16x16xf32>
    %18 = tpu.concatenate %17, %10 in 1 : vector<16x16xf32>, vector<16x16xf32> -> vector<16x32xf32>
    %c0_8 = arith.constant 0 : index
    %c0_9 = arith.constant 0 : index
    %19 = vector.load %arg4[%c0_8, %c0_9] : memref<16x32xf32, #tpu.memory_space<vmem>>, vector<16x32xf32>
    tpu.vector_store %arg4[%c0_8, %c0_9], %18 {strides = array<i32>} : memref<16x32xf32, #tpu.memory_space<vmem>>, vector<16x32xf32>,
    return
  }
  func.func @transform_0(%arg0: i32) -> (i32, i32) {
    %c0_i32 = arith.constant 0 : i32
    %c0_i32_0 = arith.constant 0 : i32
    return %arg0, %c0_i32 : i32, i32
  }
  func.func @transform_1(%arg0: i32) -> (i32, i32) {
    %c0_i32 = arith.constant 0 : i32
    %c0_i32_0 = arith.constant 0 : i32
    %c0_i32_1 = arith.constant 0 : i32
    return %c0_i32, %c0_i32_0 : i32, i32
  }
  func.func @transform_2(%arg0: i32) -> (i32, i32) {
    %c0_i32 = arith.constant 0 : i32
    %c0_i32_0 = arith.constant 0 : i32
    %c0_i32_1 = arith.constant 0 : i32
    return %c0_i32, %c0_i32_0 : i32, i32
  }
  func.func @transform_3(%arg0: i32) -> (i32, i32) {
    %c0_i32 = arith.constant 0 : i32
    %c0_i32_0 = arith.constant 0 : i32
    return %arg0, %c0_i32 : i32, i32
  }
}

</mosaic_0001>

<bundles_post_ra>
// kernel: tpu_custom_call.1
= control target key start
LH: loop header
LB: loop body
LE: loop exit
PB: predicated region body
PF: predicated region fallthrough
CT: control target
= control target key end

     0   :  { %vm28_vm0 = vcmask 261120   ;;  %s302_s0 = inlined_call_operand.vmem [shape: f32[16,32], index: 0, kind: input, shape index: {}]   ;;  %s303_s1 = inlined_call_operand.vmem [shape: f32[32,16], index: 1, kind: input, shape index: {}]   ;;  %s304_s2 = inlined_call_operand.vmem [shape: f32[1,16], index: 2, kind: input, shape index: {}]   ;;  %s305_s3 = inlined_call_operand.hbm [shape: f32[16,32], index: 3, kind: output, shape index: {}]  }
   0x1   :  { %v17_v0 = vld [vmem:[%s303_s1] sm:$0xff]  ;;  %v18_v1 = vld [vmem:[%s303_s1 + $0x8] sm:$0xff]  ;;  %v19_v2 = vld [vmem:[%s303_s1 + $0x10] sm:$0xff] }
   0x2   :  { %v189_v3 = vpack.c.bf16 %v18_v1, %v17_v0  ;;  %v20_v4 = vld [vmem:[%s303_s1 + $0x18] sm:$0xff]  ;;  %v15_v5 = vld [vmem:[%s302_s0] sm:$0xff] }
   0x3   :  { %v193_v6 = vpack.c.bf16 %v20_v4, %v19_v2  ;;  %186 = vmatprep.mubr.msk.f32.mxu0 %vm28_vm0, %v15_v5 }
   0x4   :  { %8 = vsyncpa [#allocation3], 0  ;;  %190 = vmatprep.subr.bf16.mxu0 %v189_v3  ;;  %v16_v7 = vld [vmem:[%s302_s0 + $0x8] sm:$0xff]  ;;  %v165_v8 = vld [vmem:[%s304_s2] ss:$0 sm:$0xff]  ;;  %s241_s0 = smov 16  }
   0x5   :  { %192 = vmatpush3.bf16.msra.mxu0 %v189_v3  ;;  %vm144_vm1 = vcmask 130048   ;;  %s242_s2 = smov [#allocation2]  }
   0x6   :  { %194 = vmatprep.subr.bf16.mxu0 %v193_v6  ;;  %s154_s25 = sshll.u32 %s242_s2, 4  ;;  %s155_s25 = int_to_ptr.vmem [resolvable:$true] %s154_s25 }
   0x7   :  { %s217_s26 = scalar_lea.vmem %s155_s25, 256  ;;  %p222_p1 = scmp.lt.s32.totalorder %s155_s25, %s155_s25 }
   0x8   :  { %p218_p0 = scmp.ne.s32.totalorder %s155_s25, %s217_s26  ;;  %p223_p2 = scmp.lt.s32.totalorder %s217_s26, %s217_s26 }
   0x9   :  { %196 = vmatpush3.bf16.msra.mxu0 %v193_v6 }
   0xa   :  { %p224_p3 = por %p223_p2, %p222_p1 }
   0xc   :  { %187 = vmatmul.mubr.msk.f32.vlgmr.msra.gmra.mrb[0].mxu0 %vm28_vm0, %v16_v7  ;;  %p225_p4 = pnand %p224_p3, %p218_p0 }
  0xdf   :  { %v188_v9 = vpop.f32.mrb[0].mxu0 }
  0xe0   :  { %v107_v10 = vadd.f32 %v188_v9, %v165_v8  ;;  %v101_v11 = vpop.f32.mrb[1].mxu0 }
  0xe1   :  { %v102_v12 = vadd.f32 %v165_v8, %v101_v11 }
  0xe2   :  { %v169_v13 = vmul.f32 -1.442695, %v107_v10  ;;  %v123_v22 = vsub.f32 0.0, %v107_v10 }
  0xe3   :  { %v168_v14 = vmul.f32 -1.442695, %v102_v12  ;;  %v122_v21 = vsub.f32 0.0, %v102_v12 }
  0xe4   :  { %201 = vpow2.f32 %v169_v13  ;;  %v171_v24 = vmul.f32 -1.442695, %v123_v22 }
  0xe5   :  { %203 = vpow2.f32 %v168_v14  ;;  %v170_v23 = vmul.f32 -1.442695, %v122_v21 }
  0xee   :  { %v202_v15 = vpop.eup %201 }
  0xef   :  { %v204_v16 = vpop.eup %203  ;;  %v117_v18 = vadd.f32 1.0, %v202_v15 }
  0xf0   :  { %v116_v17 = vadd.f32 1.0, %v204_v16 }
  0xf2   :  { %205 = vrcp.f32 %v116_v17 }
  0xf3   :  { %207 = vrcp.f32 %v117_v18 }
  0xf4   :  { %209 = vpow2.f32 %v170_v23 }
  0xf5   :  { %211 = vpow2.f32 %v171_v24 }
  0xfc   :  { %v206_v19 = vpop.eup %205 }
  0xfd   :  { %138 = vrot.lane.b32.xlu0 %v206_v19, %s241_s0  ;;  %v208_v20 = vpop.eup %207 }
  0xfe   :  { %v210_v25 = vpop.eup %209 }
  0xff   :  { %v130_v26 = vadd.f32 1.0, %v210_v25  ;;  %v212_v27 = vpop.eup %211 }
 0x100   :  { %v131_v28 = vadd.f32 1.0, %v212_v27 }
 0x101   :  { %140 = vrot.lane.b32.xlu0 %v208_v20, %s241_s0  ;;  %213 = vrcp.f32 %v130_v26 }
 0x102   :  { %215 = vrcp.f32 %v131_v28 }
 0x10b   :  { %v214_v29 = vpop.eup %213 }
 0x10c   :  { %v216_v32 = vpop.eup %215 }
 0x16f   :  { %v139_v30 = vpop.permute.xlu0 %138 }
 0x170   :  { %v145_v31 = vsel %vm144_vm1, %v214_v29, %v139_v30 }
 0x171   :  { %147 = vst.msk [vmem:[#allocation2] sm:$0xff] %vm28_vm0, %v145_v31 }
 0x173   :  { %v141_v33 = vpop.permute.xlu0 %140 }
 0x174   :  { %v146_v34 = vsel %vm144_vm1, %v216_v32, %v141_v33 }
 0x175   :  { %148 = vst.msk [vmem:[#allocation2 + $0x8] sm:$0xff] %vm28_vm0, %v146_v34 }
 0x176   :  { %228 = shalt.err (!%p225_p4)
}
 0x177   :  { %s229_s29 = scalar_lea.hbm %s305_s3, 256 }
 0x178   :  { %p230_p5 = scmp.ne.s32.totalorder %s305_s3, %s229_s29  ;;  %p233_p6 = scmp.lt.u32.totalorder %s229_s29, %s305_s3 }
 0x17a   :  { %p235_p7 = pnand %p233_p6, %p230_p5 }
 0x17c   :  { %238 = shalt.err (!%p235_p7)
}
 0x17d   :  { %s243_s7 = smov 128   ;;  %s244_s8 = smov 8  }
 0x17e   :  { %160 = dma.vmem_to_hbm [thread:$0]  %s155_s25, 256, %s305_s3, [#allocation3], %s243_s7, %s243_s7, %s244_s8  }
 0x17f   :  { %239 = dma.done.wait [#allocation3], 256  }
 0x180   :  { %240 = vsyncadd [#allocation3], 4294967040 }
 0x181   :  { %164 = vsyncpa [#allocation3], 1 }

</bundles_post_ra>
